<compile_context>
chip_gen: v6e
topology: v6e:2x2x1
jax: 0.10.0
libtpu: 0.0.40
codegen_flags: <defaults>
</compile_context>

<pallas_src>
import functools

import jax
import jax.numpy as jnp
from jax.experimental import pallas as pl
from jax.experimental.pallas import tpu as pltpu


EMB_SIZE = 300  # FeedFwdFocusedReading.emb_size


def _round_up(n, m):
    return ((n + m - 1) // m) * m


def _ffr_kernel(
    x_ref, w0_ref, wf_ref, bf_ref, out_ref, *, num_actions, hidden, head_pad
):
    """Whole forward pass for one batch tile.

    wf_ref packs [w1 | w2 | w3 | w_head] along lanes ([H, 3H+head_pad] bf16);
    bf_ref packs [b0 | b1 | b2 | b3 | b_head] ([1, 4H+head_pad] f32).  Static
    ref slices below are free views at 128-aligned offsets (H == 128 in the
    canonical config).  Matmuls run with bf16 operands / f32 accumulation on
    the MXU; tanh/softmax stay f32 on the VPU/EUP (v5e-safe).
    """
    H = hidden
    x = x_ref[...].astype(jnp.bfloat16)

    def layer(h, w, b):
        return jnp.tanh(jnp.dot(h, w, preferred_element_type=jnp.float32) + b)

    # ff: 4 x (Linear -> Tanh); Dropout layers are identity at inference.
    h = layer(x, w0_ref[...], bf_ref[:, 0:H])
    h = layer(h.astype(jnp.bfloat16), wf_ref[:, 0:H],       bf_ref[:, H:2 * H])
    h = layer(h.astype(jnp.bfloat16), wf_ref[:, H:2 * H],   bf_ref[:, 2 * H:3 * H])
    h = layer(h.astype(jnp.bfloat16), wf_ref[:, 2 * H:3 * H], bf_ref[:, 3 * H:4 * H])

    # Fused pi + v head: one matmul, one lane-dense [TB, head_pad] store.
    fused = (
        jnp.dot(
            h.astype(jnp.bfloat16),
            wf_ref[:, 3 * H:3 * H + head_pad],
            preferred_element_type=jnp.float32,
        )
        + bf_ref[:, 4 * H:4 * H + head_pad]
    )  # lanes [0, A) = pi logits, lane A = value, rest = padding.

    col = jax.lax.broadcasted_iota(jnp.int32, fused.shape, 1)
    logits = jnp.where(col < num_actions, fused, jnp.float32(-1e30))

    m = jnp.max(logits, axis=-1, keepdims=True)
    e = jnp.exp(logits - m)                        # pad / value lanes -> 0
    denom = jnp.sum(e, axis=-1, keepdims=True)
    # EUP approximate reciprocal + one Newton step (~1e-6 relative error).
    r = pl.reciprocal(denom, approx=True)
    r = r * (2.0 - denom * r)
    probs = e * r

    # Keep f32 output (exact value head); bf16 output would save ~10% HBM
    # traffic if downstream tolerates ~1e-3 on probabilities.
    out_ref[...] = jnp.where(col == num_actions, fused, probs).astype(out_ref.dtype)


def prepare_params(params):
    """One-time (outside jit) parameter preparation.

    PyTorch-convention (out,in) weights -> [in,out]; the three hidden weights
    plus the pi/v head (padded to 128 lanes) are fused into a single bf16
    [H, 3H+128] buffer and all five biases into a single f32 [1, 4H+128]
    buffer, so the kernel has only 3 weight inputs (w0, wf, bf).
    Returns ((w0, wf, bf), num_actions).
    """
    w0, b0, w1, b1, w2, b2, w3, b3, wpi, bpi, wv, bv = params
    num_actions = wpi.shape[0]
    hidden = w0.shape[0]
    assert (
        w1.shape == (hidden, hidden)
        and w2.shape == (hidden, hidden)
        and w3.shape == (hidden, hidden)
    ), "fused-weight path assumes four equal hidden layer sizes"
    head_pad = max(_round_up(num_actions + 1, 128), 128)

    wh = jnp.zeros((hidden, head_pad), jnp.float32)
    wh = wh.at[:, :num_actions].set(wpi.T)
    wh = wh.at[:, num_actions].set(wv.reshape(-1))
    bh = jnp.zeros((head_pad,), jnp.float32)
    bh = bh.at[:num_actions].set(bpi)
    bh = bh.at[num_actions].set(bv[0])

    w0p = w0.T.astype(jnp.bfloat16)                                   # [D, H]
    wf = jnp.concatenate([w1.T, w2.T, w3.T, wh], axis=1).astype(jnp.bfloat16)
    bf = jnp.concatenate([b0, b1, b2, b3, bh]).reshape(1, -1).astype(jnp.float32)

    return (w0p, wf, bf), num_actions


@functools.partial(
    jax.jit, static_argnames=("num_actions", "use_embeddings", "entity_dropout")
)
def feedfwd_focused_reading_forward(
    obs, prepared_params, *, num_actions, use_embeddings=True, entity_dropout=0.0
):
    """JAX wrapper: tile-size selection + pallas_call + head slicing only.

    obs may be f32 or bf16 (bf16 halves the dominant HBM read); no copy or
    pad of obs is performed here.
    """
    w0, wf, bf = prepared_params
    B, D = obs.shape
    hidden = w0.shape[1]
    head_pad = wf.shape[1] - 3 * hidden

    if use_embeddings:
        # With p == 0.0 the F.dropout + slice + concat is exactly the identity,
        # so we skip it entirely (no extra HBM round-trip).
        # TODO(synk): stochastic entity dropout (p > 0, training) not implemented.
        assert entity_dropout == 0.0, "stochastic entity dropout not implemented"
    x = obs

    # Batch tiling: large tiles amortize the ~0.35 us per-step overhead; for
    # B >= 256 guarantee >= 2 tiles so both v7x TensorCores participate under
    # dimension_semantics=("parallel",).  No jnp.pad: Pallas handles the
    # ragged trailing tile (OOB reads are garbage, OOB writes are dropped).
    TB = min(1024, _round_up(B, 8))
    if B >= 256:
        TB = min(TB, _round_up(pl.cdiv(B, 2), 8))
    grid = (pl.cdiv(B, TB),)

    kernel = functools.partial(
        _ffr_kernel, num_actions=num_actions, hidden=hidden, head_pad=head_pad
    )

    out = pl.pallas_call(
        kernel,
        out_shape=jax.ShapeDtypeStruct((B, head_pad), jnp.float32),
        grid=grid,
        in_specs=[
            pl.BlockSpec((TB, D), lambda i: (i, 0)),
            pl.BlockSpec(w0.shape, lambda i: (0, 0)),
            pl.BlockSpec(wf.shape, lambda i: (0, 0)),
            pl.BlockSpec(bf.shape, lambda i: (0, 0)),
        ],
        out_specs=pl.BlockSpec((TB, head_pad), lambda i: (i, 0)),
        compiler_params=pltpu.CompilerParams(
            dimension_semantics=("parallel",)
        ),
    )(x, w0, wf, bf)

    dist = out[:, :num_actions]
    val = out[:, num_actions]
    return dist, val


def _init_params(key, input_shape, layers_size, action_space_size):
    """Deterministic PyTorch-Linear-style init: W ~ U(-k, k), b ~ U(-k, k)."""
    sizes_in = [input_shape] + layers_size[:-1]
    sizes_out = layers_size
    params = []
    for fan_in, fan_out in zip(sizes_in, sizes_out):
        key, kw, kb = jax.random.split(key, 3)
        bound = 1.0 / jnp.sqrt(fan_in)
        params.append(
            jax.random.uniform(kw, (fan_out, fan_in), jnp.float32, -bound, bound)
        )
        params.append(
            jax.random.uniform(kb, (fan_out,), jnp.float32, -bound, bound)
        )
    # pi head
    key, kw, kb = jax.random.split(key, 3)
    bound = 1.0 / jnp.sqrt(layers_size[-1])
    params.append(
        jax.random.uniform(
            kw, (action_space_size, layers_size[-1]), jnp.float32, -bound, bound
        )
    )
    params.append(
        jax.random.uniform(kb, (action_space_size,), jnp.float32, -bound, bound)
    )
    # v head
    key, kw, kb = jax.random.split(key, 3)
    params.append(
        jax.random.uniform(kw, (1, layers_size[-1]), jnp.float32, -bound, bound)
    )
    params.append(jax.random.uniform(kb, (1,), jnp.float32, -bound, bound))
    return tuple(params)


def _reference_forward(obs, params):
    """Pure-JAX reference (inference mode), matching the kernel's bf16 matmuls."""
    w0, b0, w1, b1, w2, b2, w3, b3, wpi, bpi, wv, bv = params

    def lin(x, w, b):
        return jnp.dot(
            x.astype(jnp.bfloat16), w.T.astype(jnp.bfloat16),
            preferred_element_type=jnp.float32,
        ) + b

    x = jnp.tanh(lin(obs, w0, b0))
    x = jnp.tanh(lin(x, w1, b1))
    x = jnp.tanh(lin(x, w2, b2))
    x = jnp.tanh(lin(x, w3, b3))
    dist = jax.nn.softmax(lin(x, wpi, bpi), axis=-1)
    val = lin(x, wv, bv).squeeze(-1)
    return dist, val


if __name__ == "__main__":
    # Shapes consistent with the module: lead_dim=1 -> obs is [B, D].
    input_shape = EMB_SIZE * 2 + 40          # 600 embedding cols + 40 features
    layers_size = [128, 128, 128, 128]
    action_space_size = 16

    key = jax.random.PRNGKey(0)
    params = _init_params(key, input_shape, layers_size, action_space_size)

    # One-time parameter preparation (outside the per-step jit'd call).
    prepared, num_actions = prepare_params(params)
    prepared = jax.block_until_ready(prepared)

    ok = True
    # B=8: single-tile per-step path.  B=275: multi-tile (grid=2) + ragged
    # trailing tile (exercises the no-pad path).
    for B in (8, 275):
        key, kobs = jax.random.split(key)
        obs = jax.random.normal(kobs, (B, input_shape), dtype=jnp.float32)
        # prev_action / prev_reward are accepted but unused by the reference forward.
        prev_action = jnp.zeros((B, action_space_size), jnp.float32)
        prev_reward = jnp.zeros((B, 1), jnp.float32)

        dist, val = feedfwd_focused_reading_forward(
            obs, prepared, num_actions=num_actions,
            use_embeddings=True, entity_dropout=0.0,
        )
        jax.block_until_ready((dist, val))

        dist_ref, val_ref = _reference_forward(obs, params)
        ok &= dist.shape == (B, action_space_size) and val.shape == (B,)
        ok &= bool(jnp.allclose(dist, dist_ref, atol=1e-3, rtol=1e-3))
        ok &= bool(jnp.allclose(val, val_ref, atol=1e-3, rtol=1e-3))
        ok &= bool(jnp.allclose(jnp.sum(dist, axis=-1), 1.0, atol=1e-3))

    assert ok
    print("KERNEL_OK")
</pallas_src>

<mosaic_0001>
module attributes {stable_mosaic.version = 11 : i64} {
  func.func @_ffr_kernel(%arg0: i32, %arg1: memref<8x640xf32, #tpu.memory_space<vmem>>, %arg2: memref<640x128xbf16, #tpu.memory_space<vmem>>, %arg3: memref<128x512xbf16, #tpu.memory_space<vmem>>, %arg4: memref<1x640xf32, #tpu.memory_space<vmem>>, %arg5: memref<8x128xf32, #tpu.memory_space<vmem>>) attributes {dimension_semantics = [#tpu.dimension_semantics<parallel>], iteration_bounds = array<i64: 1>, scalar_prefetch = 0 : i64, scratch_operands = 0 : i64, tpu.core_type = #tpu.core_type<tc>, window_params = [{transform_indices = @transform_0, window_bounds = array<i64: 8, 640>}, {pipeline_mode = #tpu.pipeline_mode<synchronous>, transform_indices = @transform_1, window_bounds = array<i64: 640, 128>}, {pipeline_mode = #tpu.pipeline_mode<synchronous>, transform_indices = @transform_2, window_bounds = array<i64: 128, 512>}, {pipeline_mode = #tpu.pipeline_mode<synchronous>, transform_indices = @transform_3, window_bounds = array<i64: 1, 640>}, {transform_indices = @transform_4, window_bounds = array<i64: 8, 128>}]} {
    %c0 = arith.constant 0 : index
    %c0_0 = arith.constant 0 : index
    %0 = vector.load %arg1[%c0, %c0_0] : memref<8x640xf32, #tpu.memory_space<vmem>>, vector<8x640xf32>
    %1 = arith.truncf %0 : vector<8x640xf32> to vector<8x640xbf16>
    %c0_1 = arith.constant 0 : index
    %c0_2 = arith.constant 0 : index
    %2 = vector.load %arg2[%c0_1, %c0_2] : memref<640x128xbf16, #tpu.memory_space<vmem>>, vector<640x128xbf16>
    %c0_3 = arith.constant 0 : index
    %c0_4 = arith.constant 0 : index
    %3 = vector.load %arg4[%c0_3, %c0_4] : memref<1x640xf32, #tpu.memory_space<vmem>>, vector<1x128xf32>
    %cst = arith.constant dense<0.000000e+00> : vector<8x128xf32>
    %4 = tpu.matmul %1, %2, %cst {dimension_numbers = #tpu.dot_dimension_numbers<[1], [0], [0], [1], [0, 0, 1, 1], [], []>} : vector<8x640xbf16>, vector<640x128xbf16>, vector<8x128xf32> -> vector<8x128xf32>
    %5 = vector.broadcast %3 : vector<1x128xf32> to vector<8x128xf32>
    %6 = arith.addf %4, %5 : vector<8x128xf32>
    %7 = math.tanh %6 : vector<8x128xf32>
    %8 = arith.truncf %7 : vector<8x128xf32> to vector<8x128xbf16>
    %c0_5 = arith.constant 0 : index
    %c0_6 = arith.constant 0 : index
    %9 = vector.load %arg3[%c0_5, %c0_6] : memref<128x512xbf16, #tpu.memory_space<vmem>>, vector<128x128xbf16>
    %c0_7 = arith.constant 0 : index
    %c128 = arith.constant 128 : index
    %10 = vector.load %arg4[%c0_7, %c128] : memref<1x640xf32, #tpu.memory_space<vmem>>, vector<1x128xf32>
    %cst_8 = arith.constant dense<0.000000e+00> : vector<8x128xf32>
    %11 = tpu.matmul %8, %9, %cst_8 {dimension_numbers = #tpu.dot_dimension_numbers<[1], [0], [0], [1], [0, 0, 1, 1], [], []>} : vector<8x128xbf16>, vector<128x128xbf16>, vector<8x128xf32> -> vector<8x128xf32>
    %12 = vector.broadcast %10 : vector<1x128xf32> to vector<8x128xf32>
    %13 = arith.addf %11, %12 : vector<8x128xf32>
    %14 = math.tanh %13 : vector<8x128xf32>
    %15 = arith.truncf %14 : vector<8x128xf32> to vector<8x128xbf16>
    %c0_9 = arith.constant 0 : index
    %c128_10 = arith.constant 128 : index
    %16 = vector.load %arg3[%c0_9, %c128_10] : memref<128x512xbf16, #tpu.memory_space<vmem>>, vector<128x128xbf16>
    %c0_11 = arith.constant 0 : index
    %c256 = arith.constant 256 : index
    %17 = vector.load %arg4[%c0_11, %c256] : memref<1x640xf32, #tpu.memory_space<vmem>>, vector<1x128xf32>
    %cst_12 = arith.constant dense<0.000000e+00> : vector<8x128xf32>
    %18 = tpu.matmul %15, %16, %cst_12 {dimension_numbers = #tpu.dot_dimension_numbers<[1], [0], [0], [1], [0, 0, 1, 1], [], []>} : vector<8x128xbf16>, vector<128x128xbf16>, vector<8x128xf32> -> vector<8x128xf32>
    %19 = vector.broadcast %17 : vector<1x128xf32> to vector<8x128xf32>
    %20 = arith.addf %18, %19 : vector<8x128xf32>
    %21 = math.tanh %20 : vector<8x128xf32>
    %22 = arith.truncf %21 : vector<8x128xf32> to vector<8x128xbf16>
    %c0_13 = arith.constant 0 : index
    %c256_14 = arith.constant 256 : index
    %23 = vector.load %arg3[%c0_13, %c256_14] : memref<128x512xbf16, #tpu.memory_space<vmem>>, vector<128x128xbf16>
    %c0_15 = arith.constant 0 : index
    %c384 = arith.constant 384 : index
    %24 = vector.load %arg4[%c0_15, %c384] : memref<1x640xf32, #tpu.memory_space<vmem>>, vector<1x128xf32>
    %cst_16 = arith.constant dense<0.000000e+00> : vector<8x128xf32>
    %25 = tpu.matmul %22, %23, %cst_16 {dimension_numbers = #tpu.dot_dimension_numbers<[1], [0], [0], [1], [0, 0, 1, 1], [], []>} : vector<8x128xbf16>, vector<128x128xbf16>, vector<8x128xf32> -> vector<8x128xf32>
    %26 = vector.broadcast %24 : vector<1x128xf32> to vector<8x128xf32>
    %27 = arith.addf %25, %26 : vector<8x128xf32>
    %28 = math.tanh %27 : vector<8x128xf32>
    %29 = arith.truncf %28 : vector<8x128xf32> to vector<8x128xbf16>
    %c0_17 = arith.constant 0 : index
    %c384_18 = arith.constant 384 : index
    %30 = vector.load %arg3[%c0_17, %c384_18] : memref<128x512xbf16, #tpu.memory_space<vmem>>, vector<128x128xbf16>
    %cst_19 = arith.constant dense<0.000000e+00> : vector<8x128xf32>
    %31 = tpu.matmul %29, %30, %cst_19 {dimension_numbers = #tpu.dot_dimension_numbers<[1], [0], [0], [1], [0, 0, 1, 1], [], []>} : vector<8x128xbf16>, vector<128x128xbf16>, vector<8x128xf32> -> vector<8x128xf32>
    %c0_20 = arith.constant 0 : index
    %c512 = arith.constant 512 : index
    %32 = vector.load %arg4[%c0_20, %c512] : memref<1x640xf32, #tpu.memory_space<vmem>>, vector<1x128xf32>
    %33 = vector.broadcast %32 : vector<1x128xf32> to vector<8x128xf32>
    %34 = arith.addf %31, %33 : vector<8x128xf32>
    %35 = tpu.iota {dimensions = array<i32: 1>} : vector<8x128xi32>
    %c16_i32 = arith.constant 16 : i32
    %36 = vector.broadcast %c16_i32 : i32 to vector<8x128xi32>
    %37 = arith.cmpi slt, %35, %36 : vector<8x128xi32>
    %cst_21 = arith.constant -1.000000e+30 : f32
    %38 = vector.broadcast %cst_21 : f32 to vector<8x128xf32>
    %39 = arith.select %37, %34, %38 : vector<8x128xi1>, vector<8x128xf32>
    %cst_22 = arith.constant dense<0xFF800000> : vector<8xf32>
    %40 = vector.multi_reduction <maximumf>, %39, %cst_22 [1] : vector<8x128xf32> to vector<8xf32>
    %41 = vector.shape_cast %40 : vector<8xf32> to vector<8x1xf32>
    %42 = vector.broadcast %41 : vector<8x1xf32> to vector<8x128xf32>
    %43 = arith.subf %39, %42 : vector<8x128xf32>
    %44 = math.exp %43 : vector<8x128xf32>
    %cst_23 = arith.constant dense<0.000000e+00> : vector<8xf32>
    %45 = vector.multi_reduction <add>, %44, %cst_23 [1] : vector<8x128xf32> to vector<8xf32>
    %46 = vector.shape_cast %45 : vector<8xf32> to vector<8x1xf32>
    %47 = tpu.reciprocal %46 {approx = true} : vector<8x1xf32> -> vector<8x1xf32>
    %48 = arith.mulf %46, %47 : vector<8x1xf32>
    %cst_24 = arith.constant 2.000000e+00 : f32
    %49 = vector.broadcast %cst_24 : f32 to vector<8x1xf32>
    %50 = arith.subf %49, %48 : vector<8x1xf32>
    %51 = arith.mulf %47, %50 : vector<8x1xf32>
    %52 = vector.broadcast %51 : vector<8x1xf32> to vector<8x128xf32>
    %53 = arith.mulf %44, %52 : vector<8x128xf32>
    %c16_i32_25 = arith.constant 16 : i32
    %54 = vector.broadcast %c16_i32_25 : i32 to vector<8x128xi32>
    %55 = arith.cmpi eq, %35, %54 : vector<8x128xi32>
    %56 = arith.select %55, %34, %53 : vector<8x128xi1>, vector<8x128xf32>
    %c0_26 = arith.constant 0 : index
    %c0_27 = arith.constant 0 : index
    %57 = vector.load %arg5[%c0_26, %c0_27] : memref<8x128xf32, #tpu.memory_space<vmem>>, vector<8x128xf32>
    tpu.vector_store %arg5[%c0_26, %c0_27], %56 {strides = array<i32>} : memref<8x128xf32, #tpu.memory_space<vmem>>, vector<8x128xf32>,
    return
  }
  func.func @transform_0(%arg0: i32) -> (i32, i32) {
    %c0_i32 = arith.constant 0 : i32
    %c0_i32_0 = arith.constant 0 : i32
    return %arg0, %c0_i32 : i32, i32
  }
  func.func @transform_1(%arg0: i32) -> (i32, i32) {
    %c0_i32 = arith.constant 0 : i32
    %c0_i32_0 = arith.constant 0 : i32
    %c0_i32_1 = arith.constant 0 : i32
    return %c0_i32, %c0_i32_0 : i32, i32
  }
  func.func @transform_2(%arg0: i32) -> (i32, i32) {
    %c0_i32 = arith.constant 0 : i32
    %c0_i32_0 = arith.constant 0 : i32
    %c0_i32_1 = arith.constant 0 : i32
    return %c0_i32, %c0_i32_0 : i32, i32
  }
  func.func @transform_3(%arg0: i32) -> (i32, i32) {
    %c0_i32 = arith.constant 0 : i32
    %c0_i32_0 = arith.constant 0 : i32
    %c0_i32_1 = arith.constant 0 : i32
    return %c0_i32, %c0_i32_0 : i32, i32
  }
  func.func @transform_4(%arg0: i32) -> (i32, i32) {
    %c0_i32 = arith.constant 0 : i32
    %c0_i32_0 = arith.constant 0 : i32
    return %arg0, %c0_i32 : i32, i32
  }
}

</mosaic_0001>

<bundles_post_ra>
// kernel: feedfwd_focused_reading_forward.1
= control target key start
LH: loop header
LB: loop body
LE: loop exit
PB: predicated region body
PF: predicated region fallthrough
CT: control target
= control target key end

     0   :  { %9 = vsyncpa [#allocation3], 0  ;;  %s1525_s0 = inlined_call_operand.hbm [shape: f32[8,640], index: 0, kind: input, shape index: {}]   ;;  %s1526_s1 = inlined_call_operand.hbm [shape: bf16[640,128], index: 1, kind: input, shape index: {}]   ;;  %s1527_s2 = inlined_call_operand.hbm [shape: bf16[128,512], index: 2, kind: input, shape index: {}]   ;;  %s1528_s3 = inlined_call_operand.vmem [shape: f32[1,640], index: 3, kind: input, shape index: {}]   ;;  %s1529_s4 = inlined_call_operand.vmem [shape: f32[8,128], index: 4, kind: output, shape index: {}]  }
   0x1   :  { %10 = vsyncpa [#allocation5], 0  ;;  %s1414_s15 = smov [#allocation4]  }
   0x2   :  { %s26_s16 = sshll.u32 %s1414_s15, 4  ;;  %s27_s16 = int_to_ptr.vmem [resolvable:$true] %s26_s16 }
   0x3   :  { %s1358_s17 = scalar_lea.vmem %s27_s16, 5120  ;;  %p1363_p1 = scmp.lt.s32.totalorder %s27_s16, %s27_s16 }
   0x4   :  { %p1359_p0 = scmp.ne.s32.totalorder %s27_s16, %s1358_s17  ;;  %p1364_p2 = scmp.lt.s32.totalorder %s1358_s17, %s1358_s17 }
   0x6   :  { %p1365_p3 = por %p1364_p2, %p1363_p1 }
   0x8   :  { %p1366_p4 = pnand %p1365_p3, %p1359_p0 }
   0xa   :  { %1369 = shalt.err (!%p1366_p4)
}
   0xb   :  { %s1415_s18 = smov 64   ;;  %s1416_s19 = smov 4  }
   0xc   :  { %32 = dma.hbm_to_vmem [thread:$0]  %s1526_s1, 5120, %s27_s16, [#allocation5], %s1415_s18, %s1415_s18, %s1416_s19  }
   0xd   :  { %s1417_s22 = smov [#allocation2]   ;;  %s1418_s24 = smov [#allocation6]  }
   0xe   :  { %s17_s23 = sshll.u32 %s1417_s22, 4  ;;  %s38_s25 = sshll.u32 %s1418_s24, 4  ;;  %s18_s23 = int_to_ptr.vmem [resolvable:$true] %s17_s23  ;;  %s39_s25 = int_to_ptr.vmem [resolvable:$true] %s38_s25 }
   0xf   :  { %s1378_s26 = scalar_lea.vmem %s18_s23, 640  ;;  %p1383_p6 = scmp.lt.s32.totalorder %s18_s23, %s18_s23 }
  0x10   :  { %p1379_p5 = scmp.ne.s32.totalorder %s18_s23, %s1378_s26  ;;  %p1384_p7 = scmp.lt.s32.totalorder %s1378_s26, %s1378_s26 }
  0x12   :  { %p1385_p8 = por %p1384_p7, %p1383_p6 }
  0x14   :  { %p1386_p9 = pnand %p1385_p8, %p1379_p5 }
  0x16   :  { %1389 = shalt.err (!%p1386_p9)
}
  0x17   :  { %20 = dma.hbm_to_vmem [thread:$0]  %s1525_s0, 640, %s18_s23, [#allocation3]  }
  0x18   :  { %s1398_s29 = scalar_lea.vmem %s39_s25, 4096  ;;  %p1403_p11 = scmp.lt.s32.totalorder %s39_s25, %s39_s25 }
  0x19   :  { %p1399_p10 = scmp.ne.s32.totalorder %s39_s25, %s1398_s29  ;;  %p1404_p12 = scmp.lt.s32.totalorder %s1398_s29, %s1398_s29 }
  0x1b   :  { %p1405_p13 = por %p1404_p12, %p1403_p11 }
  0x1d   :  { %p1406_p0 = pnand %p1405_p13, %p1399_p10 }
  0x1f   :  { %1409 = shalt.err (!%p1406_p0)
}
  0x20   :  { %s1419_s1 = smov 256   ;;  %s1420_s30 = smov 16  }
  0x21   :  { %44 = dma.hbm_to_vmem [thread:$0]  %s1527_s2, 4096, %s39_s25, [#allocation5], %s1419_s1, %s1419_s1, %s1420_s30  }
  0x22   :  { %1410 = dma.done.wait [#allocation3], 640  }
  0x23   :  { %1411 = vsyncadd [#allocation3], 4294966656 }
  0x24   :  { %1412 = dma.done.wait [#allocation5], 9216  }
  0x25   :  { %1413 = vsyncadd [#allocation5], 4294958080  ;;  %v1266_v0 = vld [vmem:[#allocation4 + $0x78] sm:$0xff]   ;;  %v1270_v4 = vld [vmem:[#allocation4 + $0x70] sm:$0xff]   ;;  %v1421_v35 = vmov 0.0   ;;  %vm1422_vm0 = vmmov 0  }
  0x26   :  { %v1267_v1 = vld [vmem:[#allocation4 + $0x38] sm:$0xff]   ;;  %1068 = vmatprep.subr.bf16.mxu0 %v1266_v0  ;;  %v1271_v5 = vld [vmem:[#allocation4 + $0x30] sm:$0xff]   ;;  %v1274_v8 = vld [vmem:[#allocation4 + $0x68] sm:$0xff]  }
  0x27   :  { %v1268_v2 = vld [vmem:[#allocation4 + $0xf8] sm:$0xff]   ;;  %1069 = vmatpush3.bf16.msra.mxu0 %v1267_v1  ;;  %v1272_v6 = vld [vmem:[#allocation4 + $0xf0] sm:$0xff]   ;;  %v1275_v9 = vld [vmem:[#allocation4 + $0x28] sm:$0xff]  }
  0x28   :  { %v1269_v3 = vld [vmem:[#allocation4 + $0xb8] sm:$0xff]   ;;  %1090 = vmatprep.subr.bf16.mxu1 %v1268_v2  ;;  %1070 = vmatprep.subr.bf16.mxu0 %v1270_v4  ;;  %v1273_v7 = vld [vmem:[#allocation4 + $0xb0] sm:$0xff]   ;;  %v1276_v10 = vld [vmem:[#allocation4 + $0xe8] sm:$0xff]  }
  0x29   :  { %1091 = vmatpush3.bf16.msra.mxu1 %v1269_v3  ;;  %v1277_v11 = vld [vmem:[#allocation4 + $0xa8] sm:$0xff]   ;;  %v1278_v12 = vld [vmem:[#allocation4 + $0x60] sm:$0xff]   ;;  %v1282_v16 = vld [vmem:[#allocation4 + $0x58] sm:$0xff]  }
  0x2a   :  { %1092 = vmatprep.subr.bf16.mxu1 %v1272_v6  ;;  %v1279_v13 = vld [vmem:[#allocation4 + $0x20] sm:$0xff]   ;;  %v1283_v17 = vld [vmem:[#allocation4 + $0x18] sm:$0xff]   ;;  %v1286_v20 = vld [vmem:[#allocation4 + $0x50] sm:$0xff]  }
  0x2b   :  { %1071 = vmatpush3.bf16.msra.mxu0 %v1271_v5  ;;  %v1280_v14 = vld [vmem:[#allocation4 + $0xe0] sm:$0xff]   ;;  %v1284_v18 = vld [vmem:[#allocation4 + $0xd8] sm:$0xff]   ;;  %v1287_v21 = vld [vmem:[#allocation4 + $0x10] sm:$0xff]  }
  0x2c   :  { %1072 = vmatprep.subr.bf16.mxu0 %v1274_v8  ;;  %v1281_v15 = vld [vmem:[#allocation4 + $0xa0] sm:$0xff]   ;;  %v1285_v19 = vld [vmem:[#allocation4 + $0x98] sm:$0xff]   ;;  %v1288_v22 = vld [vmem:[#allocation4 + $0xd0] sm:$0xff]  }
  0x2d   :  { %1093 = vmatpush3.bf16.msra.mxu1 %v1273_v7  ;;  %v1289_v23 = vld [vmem:[#allocation4 + $0x90] sm:$0xff]   ;;  %v1290_v24 = vld [vmem:[#allocation4 + $0x48] sm:$0xff]   ;;  %v1294_v28 = vld [vmem:[#allocation4 + $0x40] sm:$0xff]  }
  0x2e   :  { %1094 = vmatprep.subr.bf16.mxu1 %v1276_v10  ;;  %v1291_v25 = vld [vmem:[#allocation4 + $0x8] sm:$0xff]   ;;  %v1295_v29 = vld [vmem:[#allocation4] sm:$0xff]   ;;  %v57_v34 = vld [vmem:[#allocation2] sm:$0xff] }
  0x2f   :  { %1073 = vmatpush3.bf16.msra.mxu0 %v1275_v9  ;;  %v1292_v26 = vld [vmem:[#allocation4 + $0xc8] sm:$0xff]   ;;  %v1296_v30 = vld [vmem:[#allocation4 + $0xc0] sm:$0xff]   ;;  %v60_v36 = vld [vmem:[#allocation2 + $0x18] sm:$0xff]  ;;  %v62_v37 = vpack.c.bf16 %v57_v34, %v57_v34 }
  0x30   :  { %1074 = vmatprep.subr.bf16.mxu0 %v1278_v12  ;;  %v1293_v27 = vld [vmem:[#allocation4 + $0x88] sm:$0xff]   ;;  %v58_v31 = vld [vmem:[#allocation2 + $0x8] sm:$0xff]  ;;  %v65_v38 = vpack.c.bf16 %v60_v36, %v60_v36  ;;  %v1298_v39 = vld [vmem:[#allocation4 + $0x138] sm:$0xff]  }
  0x31   :  { %1095 = vmatpush3.bf16.msra.mxu1 %v1277_v11  ;;  %v63_v32 = vpack.c.bf16 %v58_v31, %v58_v31  ;;  %v1297_v33 = vld [vmem:[#allocation4 + $0x80] sm:$0xff]   ;;  %v59_v40 = vld [vmem:[#allocation2 + $0x10] sm:$0xff]  ;;  %v1299_v42 = vld [vmem:[#allocation4 + $0x130] sm:$0xff]  }
  0x32   :  { %1096 = vmatprep.subr.bf16.mxu1 %v1280_v14  ;;  %466 = vmatprep.mubr.bf16.mxu1 %v65_v38  ;;  %v64_v41 = vpack.c.bf16 %v59_v40, %v59_v40  ;;  %v1300_v43 = vld [vmem:[#allocation4 + $0x128] sm:$0xff]   ;;  %v1301_v44 = vld [vmem:[#allocation4 + $0x120] sm:$0xff]   ;;  %v1302_v45 = vld [vmem:[#allocation4 + $0x118] sm:$0xff]  }
  0x33   :  { %1075 = vmatpush3.bf16.msra.mxu0 %v1279_v13  ;;  %426 = vmatprep.mubr.bf16.mxu0 %v63_v32  ;;  %v1303_v46 = vld [vmem:[#allocation4 + $0x110] sm:$0xff]   ;;  %v1304_v47 = vld [vmem:[#allocation4 + $0x108] sm:$0xff]   ;;  %v1305_v48 = vld [vmem:[#allocation4 + $0x100] sm:$0xff]  }
  0x34   :  { %1076 = vmatprep.subr.bf16.mxu0 %v1282_v16  ;;  %v61_v49 = vld [vmem:[#allocation2 + $0x20] sm:$0xff]  ;;  %v1306_v51 = vld [vmem:[#allocation6 + $0xe0] ss:$16 sps:$4 sm:$0xff]   ;;  %v1314_v59 = vld [vmem:[#allocation6 + $0xe4] ss:$16 sps:$4 sm:$0xff]  }
  0x35   :  { %1097 = vmatpush3.bf16.msra.mxu1 %v1281_v15  ;;  %v66_v50 = vpack.c.bf16 %v61_v49, %v61_v49  ;;  %v1307_v52 = vld [vmem:[#allocation6 + $0xc0] ss:$16 sps:$4 sm:$0xff]   ;;  %v1315_v60 = vld [vmem:[#allocation6 + $0xc4] ss:$16 sps:$4 sm:$0xff]   ;;  %v991_v7 = vld [vmem:[%s1528_s3] ss:$0 sm:$0xff] }
  0x36   :  { %1098 = vmatprep.subr.bf16.mxu1 %v1284_v18  ;;  %v1308_v53 = vld [vmem:[#allocation6 + $0xa0] ss:$16 sps:$4 sm:$0xff]   ;;  %v1316_v61 = vld [vmem:[#allocation6 + $0xa4] ss:$16 sps:$4 sm:$0xff]   ;;  %v1325_v34 = vld [vmem:[#allocation6 + $0x88] ss:$16 sps:$4 sm:$0xff]  }
  0x37   :  { %1077 = vmatpush3.bf16.msra.mxu0 %v1283_v17  ;;  %v1309_v54 = vld [vmem:[#allocation6 + $0x80] ss:$16 sps:$4 sm:$0xff]   ;;  %v1317_v18 = vld [vmem:[#allocation6 + $0x84] ss:$16 sps:$4 sm:$0xff]   ;;  %v1326_v36 = vld [vmem:[#allocation6 + $0x68] ss:$16 sps:$4 sm:$0xff]  }
  0x38   :  { %1078 = vmatprep.subr.bf16.mxu0 %v1286_v20  ;;  %v1310_v55 = vld [vmem:[#allocation6 + $0x60] ss:$16 sps:$4 sm:$0xff]   ;;  %v1319_v20 = vld [vmem:[#allocation6 + $0x44] ss:$16 sps:$4 sm:$0xff]   ;;  %v1328_v38 = vld [vmem:[#allocation6 + $0x28] ss:$16 sps:$4 sm:$0xff]  }
  0x39   :  { %1099 = vmatpush3.bf16.msra.mxu1 %v1285_v19  ;;  %v1311_v56 = vld [vmem:[#allocation6 + $0x40] ss:$16 sps:$4 sm:$0xff]   ;;  %v1318_v19 = vld [vmem:[#allocation6 + $0x64] ss:$16 sps:$4 sm:$0xff]   ;;  %v1330_v40 = vld [vmem:[#allocation6 + $0xec] ss:$16 sps:$4 sm:$0xff]  }
  0x3a   :  { %1100 = vmatprep.subr.bf16.mxu1 %v1288_v22  ;;  %v1312_v57 = vld [vmem:[#allocation6 + $0x20] ss:$16 sps:$4 sm:$0xff]   ;;  %v1321_v22 = vld [vmem:[#allocation6 + $0x4] ss:$16 sps:$4 sm:$0xff]  }
  0x3b   :  { %1079 = vmatpush3.bf16.msra.mxu0 %v1287_v21  ;;  %v1313_v58 = vld [vmem:[#allocation6] ss:$16 sps:$4 sm:$0xff]   ;;  %v1320_v21 = vld [vmem:[#allocation6 + $0x24] ss:$16 sps:$4 sm:$0xff]  }
  0x3c   :  { %1080 = vmatprep.subr.bf16.mxu0 %v1290_v24  ;;  %v1323_v24 = vld [vmem:[#allocation6 + $0xc8] ss:$16 sps:$4 sm:$0xff]  }
  0x3d   :  { %1101 = vmatpush3.bf16.msra.mxu1 %v1289_v23  ;;  %v1322_v23 = vld [vmem:[#allocation6 + $0xe8] ss:$16 sps:$4 sm:$0xff]  }
  0x3e   :  { %1102 = vmatprep.subr.bf16.mxu1 %v1292_v26  ;;  %v1032_v26 = vld [vmem:[%s1528_s3 + $0x1] ss:$0 sm:$0xff] }
  0x3f   :  { %1081 = vmatpush3.bf16.msra.mxu0 %v1291_v25  ;;  %v1324_v25 = vld [vmem:[#allocation6 + $0xa8] ss:$16 sps:$4 sm:$0xff]  }
  0x40   :  { %1082 = vmatprep.subr.bf16.mxu0 %v1294_v28 }
  0x41   :  { %1103 = vmatpush3.bf16.msra.mxu1 %v1293_v27 }
  0x42   :  { %1104 = vmatprep.subr.bf16.mxu1 %v1296_v30 }
  0x43   :  { %1083 = vmatpush3.bf16.msra.mxu0 %v1295_v29 }
  0x44   :  { %1157 = vmatprep.subr.bf16.mxu0 %v1421_v35 }
  0x45   :  { %1105 = vmatpush3.bf16.msra.mxu1 %v1297_v33 }
  0x46   :  { %427 = vmatmul.mubr.bf16.vlgmr.msra.gmra.mxu0 %v62_v37  ;;  %1177 = vmatprep.subr.bf16.mxu1 %v1421_v35  ;;  %v1327_v37 = vld [vmem:[#allocation6 + $0x48] ss:$16 sps:$4 sm:$0xff]  }
  0x47   :  { %1158 = vmatpush3.bf16.msra.mxu0 %v1298_v39  ;;  %1173 = vmatprep.mubr.msk.bf16.mxu0 %vm1422_vm0, %v1421_v35  ;;  %v1329_v39 = vld [vmem:[#allocation6 + $0x8] ss:$16 sps:$4 sm:$0xff]  }
  0x48   :  { %467 = vmatmul.mubr.bf16.vlgmr.msra.gmra.mxu1 %v64_v41  ;;  %1159 = vmatprep.subr.bf16.mxu0 %v1421_v35  ;;  %v1331_v41 = vld [vmem:[#allocation6 + $0xcc] ss:$16 sps:$4 sm:$0xff]  }
  0x49   :  { %1193 = vmatprep.mubr.msk.bf16.mxu1 %vm1422_vm0, %v1421_v35  ;;  %1178 = vmatpush3.bf16.msra.mxu1 %v1306_v51  ;;  %v1333_v51 = vld [vmem:[#allocation6 + $0x8c] ss:$16 sps:$4 sm:$0xff]  }
  0x4a   :  { %1179 = vmatprep.subr.bf16.mxu1 %v1421_v35 }
  0x4b   :  { %1160 = vmatpush3.bf16.msra.mxu0 %v1299_v42  ;;  %v1332_v42 = vld [vmem:[#allocation6 + $0xac] ss:$16 sps:$4 sm:$0xff]  }
  0x4c   :  { %1161 = vmatprep.subr.bf16.mxu0 %v1421_v35 }
  0x4d   :  { %1180 = vmatpush3.bf16.msra.mxu1 %v1307_v52  ;;  %v1334_v52 = vld [vmem:[#allocation6 + $0x6c] ss:$16 sps:$4 sm:$0xff]  }
  0x4e   :  { %1181 = vmatprep.subr.bf16.mxu1 %v1421_v35 }
  0x4f   :  { %1162 = vmatpush3.bf16.msra.mxu0 %v1300_v43  ;;  %v1041_v43 = vld [vmem:[%s1528_s3 + $0x2] ss:$0 sm:$0xff] }
  0x50   :  { %1163 = vmatprep.subr.bf16.mxu0 %v1421_v35 }
  0x51   :  { %1182 = vmatpush3.bf16.msra.mxu1 %v1308_v53  ;;  %v1335_v53 = vld [vmem:[#allocation6 + $0x4c] ss:$16 sps:$4 sm:$0xff]  }
  0x52   :  { %1183 = vmatprep.subr.bf16.mxu1 %v1421_v35 }
  0x53   :  { %1164 = vmatpush3.bf16.msra.mxu0 %v1301_v44 }
  0x54   :  { %1165 = vmatprep.subr.bf16.mxu0 %v1421_v35 }
  0x55   :  { %1184 = vmatpush3.bf16.msra.mxu1 %v1309_v54  ;;  %v1336_v54 = vld [vmem:[#allocation6 + $0x2c] ss:$16 sps:$4 sm:$0xff]  }
  0x56   :  { %1185 = vmatprep.subr.bf16.mxu1 %v1421_v35 }
  0x57   :  { %1166 = vmatpush3.bf16.msra.mxu0 %v1302_v45 }
  0x58   :  { %1167 = vmatprep.subr.bf16.mxu0 %v1421_v35 }
  0x59   :  { %1186 = vmatpush3.bf16.msra.mxu1 %v1310_v55  ;;  %v1337_v55 = vld [vmem:[#allocation6 + $0xc] ss:$16 sps:$4 sm:$0xff]  }
  0x5a   :  { %1187 = vmatprep.subr.bf16.mxu1 %v1421_v35 }
  0x5b   :  { %1168 = vmatpush3.bf16.msra.mxu0 %v1303_v46 }
  0x5c   :  { %1169 = vmatprep.subr.bf16.mxu0 %v1421_v35 }
  0x5d   :  { %1188 = vmatpush3.bf16.msra.mxu1 %v1311_v56  ;;  %v1050_v56 = vld [vmem:[%s1528_s3 + $0x3] ss:$0 sm:$0xff] }
  0x5e   :  { %1189 = vmatprep.subr.bf16.mxu1 %v1421_v35 }
  0x5f   :  { %1170 = vmatpush3.bf16.msra.mxu0 %v1304_v47 }
  0x60   :  { %1171 = vmatprep.subr.bf16.mxu0 %v1421_v35 }
  0x61   :  { %1190 = vmatpush3.bf16.msra.mxu1 %v1312_v57 }
  0x62   :  { %1191 = vmatprep.subr.bf16.mxu1 %v1421_v35 }
  0x63   :  { %1172 = vmatpush3.bf16.msra.mxu0 %v1305_v48 }
  0x64   :  { %1197 = vmatprep.subr.bf16.mxu0 %v1421_v35 }
  0x65   :  { %1192 = vmatpush3.bf16.msra.mxu1 %v1313_v58 }
  0x66   :  { %1174 = vmatmul.mubr.bf16.vlgmr.msra.gmra.mxu0 %v66_v50  ;;  %1217 = vmatprep.subr.bf16.mxu1 %v1421_v35 }
  0x67   :  { %1213 = vmatprep.mubr.msk.bf16.mxu0 %vm1422_vm0, %v1421_v35  ;;  %1198 = vmatpush3.bf16.msra.mxu0 %v1314_v59 }
  0x68   :  { %1199 = vmatprep.subr.bf16.mxu0 %v1421_v35 }
  0x6b   :  { %1200 = vmatpush3.bf16.msra.mxu0 %v1315_v60 }
  0x6c   :  { %1201 = vmatprep.subr.bf16.mxu0 %v1421_v35 }
  0x6f   :  { %1202 = vmatpush3.bf16.msra.mxu0 %v1316_v61 }
  0x70   :  { %1203 = vmatprep.subr.bf16.mxu0 %v1421_v35 }
  0x73   :  { %1204 = vmatpush3.bf16.msra.mxu0 %v1317_v18 }
  0x74   :  { %1205 = vmatprep.subr.bf16.mxu0 %v1421_v35 }
  0x77   :  { %1206 = vmatpush3.bf16.msra.mxu0 %v1318_v19 }
  0x78   :  { %1207 = vmatprep.subr.bf16.mxu0 %v1421_v35 }
  0x7b   :  { %1208 = vmatpush3.bf16.msra.mxu0 %v1319_v20 }
  0x7c   :  { %1209 = vmatprep.subr.bf16.mxu0 %v1421_v35 }
  0x7f   :  { %1210 = vmatpush3.bf16.msra.mxu0 %v1320_v21 }
  0x80   :  { %1211 = vmatprep.subr.bf16.mxu0 %v1421_v35 }
  0x83   :  { %1212 = vmatpush3.bf16.msra.mxu0 %v1321_v22 }
  0x84   :  { %1237 = vmatprep.subr.bf16.mxu0 %v1421_v35 }
 0x106   :  { %v1084_v62 = vpop.f32.mrf.mxu0 }
 0x108   :  { %v1085_v63 = vpop.f32.mrf.mxu0  ;;  %v1106_v0 = vpop.f32.mrf.mxu1 }
 0x109   :  { %v1086_v6 = vadd.f32 %v1085_v63, %v1084_v62 }
 0x10a   :  { %v1087_v1 = vpop.f32.mrf.mxu0  ;;  %v1107_v2 = vpop.f32.mrf.mxu1 }
 0x10b   :  { %v429_v8 = vadd.f32 %v1086_v6, %v991_v7  ;;  %v1108_v9 = vadd.f32 %v1107_v2, %v1106_v0  ;;  %v966_v0 = vlaneseq }
 0x10c   :  { %v1088_v3 = vpop.f32.mrf.mxu0  ;;  %v1109_v4 = vpop.f32.mrf.mxu1 }
 0x10d   :  { %v469_v10 = vadd.f32 %v1108_v9, %v429_v8  ;;  %v967_v1 = vand.u32 127, %v966_v0 }
 0x10e   :  { %v1110_v5 = vpop.f32.mrf.mxu1 }
 0x10f   :  { %vm968_vm1 = vcmp.lt.s32.totalorder %v967_v1, 16  ;;  %vm982_vm2 = vcmp.eq.s32.totalorder %v967_v1, 16 }
 0x126   :  { %v508_v11 = vpop.f32.mrf.mxu0 }
 0x127   :  { %v509_v12 = vadd.f32 %v508_v11, %v469_v10 }
 0x128   :  { %v1175_v13 = vpop.f32.mrf.mxu0 }
 0x129   :  { %1338 = vtanh.f32 %v509_v12 }
 0x12a   :  { %v511_v14 = vpop.f32.mrf.mxu0 }
 0x12c   :  { %v1176_v15 = vpop.f32.mrf.mxu0 }
 0x136   :  { %v1339_v16 = vpop.eup %1338 }
 0x137   :  { %v515_v17 = vpack.c.bf16 %v1339_v16, %v1339_v16 }
 0x139   :  { %1194 = vmatmul.mubr.bf16.vlgmr.msra.gmra.mxu1 %v515_v17 }
 0x13a   :  { %1233 = vmatprep.mubr.msk.bf16.mxu1 %vm1422_vm0, %v1421_v35  ;;  %1218 = vmatpush3.bf16.msra.mxu1 %v1322_v23 }
 0x13b   :  { %1219 = vmatprep.subr.bf16.mxu1 %v1421_v35 }
 0x13e   :  { %1220 = vmatpush3.bf16.msra.mxu1 %v1323_v24 }
 0x13f   :  { %1221 = vmatprep.subr.bf16.mxu1 %v1421_v35 }
 0x142   :  { %1222 = vmatpush3.bf16.msra.mxu1 %v1324_v25 }
 0x143   :  { %1223 = vmatprep.subr.bf16.mxu1 %v1421_v35 }
 0x146   :  { %1224 = vmatpush3.bf16.msra.mxu1 %v1325_v34 }
 0x147   :  { %1225 = vmatprep.subr.bf16.mxu1 %v1421_v35 }
 0x14a   :  { %1226 = vmatpush3.bf16.msra.mxu1 %v1326_v36 }
 0x14b   :  { %1227 = vmatprep.subr.bf16.mxu1 %v1421_v35 }
 0x14e   :  { %1228 = vmatpush3.bf16.msra.mxu1 %v1327_v37 }
 0x14f   :  { %1229 = vmatprep.subr.bf16.mxu1 %v1421_v35 }
 0x152   :  { %1230 = vmatpush3.bf16.msra.mxu1 %v1328_v38 }
 0x153   :  { %1231 = vmatprep.subr.bf16.mxu1 %v1421_v35 }
 0x156   :  { %1232 = vmatpush3.bf16.msra.mxu1 %v1329_v39 }
 0x1f9   :  { %v621_v27 = vpop.f32.mrf.mxu1 }
 0x1fa   :  { %v622_v28 = vadd.f32 %v1032_v26, %v621_v27 }
 0x1fb   :  { %v1195_v29 = vpop.f32.mrf.mxu1 }
 0x1fc   :  { %1340 = vtanh.f32 %v622_v28 }
 0x1fd   :  { %v624_v30 = vpop.f32.mrf.mxu1 }
 0x1ff   :  { %v1196_v31 = vpop.f32.mrf.mxu1 }
 0x209   :  { %v1341_v32 = vpop.eup %1340 }
 0x20a   :  { %v628_v33 = vpack.c.bf16 %v1341_v32, %v1341_v32 }
 0x20c   :  { %1214 = vmatmul.mubr.bf16.vlgmr.msra.gmra.mxu0 %v628_v33 }
 0x20d   :  { %1253 = vmatprep.mubr.msk.bf16.mxu0 %vm1422_vm0, %v1421_v35  ;;  %1238 = vmatpush3.bf16.msra.mxu0 %v1330_v40 }
 0x20e   :  { %1239 = vmatprep.subr.bf16.mxu0 %v1421_v35 }
 0x211   :  { %1240 = vmatpush3.bf16.msra.mxu0 %v1331_v41 }
 0x212   :  { %1241 = vmatprep.subr.bf16.mxu0 %v1421_v35 }
 0x215   :  { %1242 = vmatpush3.bf16.msra.mxu0 %v1332_v42 }
 0x216   :  { %1243 = vmatprep.subr.bf16.mxu0 %v1421_v35 }
 0x219   :  { %1244 = vmatpush3.bf16.msra.mxu0 %v1333_v51 }
 0x21a   :  { %1245 = vmatprep.subr.bf16.mxu0 %v1421_v35 }
 0x21d   :  { %1246 = vmatpush3.bf16.msra.mxu0 %v1334_v52 }
 0x21e   :  { %1247 = vmatprep.subr.bf16.mxu0 %v1421_v35 }
 0x221   :  { %1248 = vmatpush3.bf16.msra.mxu0 %v1335_v53 }
 0x222   :  { %1249 = vmatprep.subr.bf16.mxu0 %v1421_v35 }
 0x225   :  { %1250 = vmatpush3.bf16.msra.mxu0 %v1336_v54 }
 0x226   :  { %1251 = vmatprep.subr.bf16.mxu0 %v1421_v35  ;;  %v1059_v35 = vld [vmem:[%s1528_s3 + $0x4] ss:$0 sm:$0xff] }
 0x229   :  { %1252 = vmatpush3.bf16.msra.mxu0 %v1337_v55 }
 0x2cc   :  { %v734_v44 = vpop.f32.mrf.mxu0 }
 0x2cd   :  { %v735_v45 = vadd.f32 %v1041_v43, %v734_v44 }
 0x2ce   :  { %v1215_v46 = vpop.f32.mrf.mxu0 }
 0x2cf   :  { %1342 = vtanh.f32 %v735_v45 }
 0x2d0   :  { %v737_v47 = vpop.f32.mrf.mxu0 }
 0x2d2   :  { %v1216_v48 = vpop.f32.mrf.mxu0 }
 0x2dc   :  { %v1343_v49 = vpop.eup %1342 }
 0x2dd   :  { %v741_v50 = vpack.c.bf16 %v1343_v49, %v1343_v49 }
 0x2df   :  { %1234 = vmatmul.mubr.bf16.vlgmr.msra.gmra.mxu1 %v741_v50 }
 0x39f   :  { %v847_v57 = vpop.f32.mrf.mxu1 }
 0x3a0   :  { %v848_v58 = vadd.f32 %v1050_v56, %v847_v57 }
 0x3a1   :  { %v1235_v59 = vpop.f32.mrf.mxu1 }
 0x3a2   :  { %1344 = vtanh.f32 %v848_v58 }
 0x3a3   :  { %v850_v60 = vpop.f32.mrf.mxu1 }
 0x3a5   :  { %v1236_v61 = vpop.f32.mrf.mxu1 }
 0x3af   :  { %v1345_v62 = vpop.eup %1344 }
 0x3b0   :  { %v854_v63 = vpack.c.bf16 %v1345_v62, %v1345_v62 }
 0x3b2   :  { %1254 = vmatmul.mubr.bf16.vlgmr.msra.gmra.mxu0 %v854_v63 }
 0x472   :  { %v960_v2 = vpop.f32.mrf.mxu0 }
 0x473   :  { %v961_v3 = vadd.f32 %v1059_v35, %v960_v2 }
 0x474   :  { %v1255_v4 = vpop.f32.mrf.mxu0 }
 0x475   :  { %v969_v5 = vsel %vm968_vm1, %v961_v3, -1e+30 }
 0x476   :  { %970 = vmax.xlane.f32.xlu0 %v969_v5  ;;  %v963_v6 = vpop.f32.mrf.mxu0 }
 0x478   :  { %v1256_v7 = vpop.f32.mrf.mxu0 }
 0x4ff   :  { %v971_v8 = vpop.xlane.xlu0 %970 }
 0x500   :  { %v972_v9 = vsub.f32 %v969_v5, %v971_v8 }
 0x502   :  { %v973_v10 = vmul.f32 1.442695, %v972_v9 }
 0x504   :  { %1346 = vpow2.f32 %v973_v10 }
 0x511   :  { %v1347_v11 = vpop.eup %1346 }
 0x512   :  { %975 = vadd.xlane.f32.xlu0 %v1347_v11 }
 0x59b   :  { %v976_v12 = vpop.xlane.xlu0 %975 }
 0x59c   :  { %1348 = vrcp.f32 %v976_v12 }
 0x5a9   :  { %v1349_v13 = vpop.eup %1348 }
 0x5aa   :  { %v978_v14 = vmul.f32 %v1349_v13, %v976_v12 }
 0x5ac   :  { %v979_v15 = vsub.f32 2.0, %v978_v14 }
 0x5ae   :  { %v980_v16 = vmul.f32 %v1349_v13, %v979_v15 }
 0x5b0   :  { %v981_v17 = vmul.f32 %v1347_v11, %v980_v16 }
 0x5b2   :  { %v983_v18 = vsel %vm982_vm2, %v961_v3, %v981_v17 }
 0x5b3   :  { %984 = vst [vmem:[%s1529_s4] sm:$0xff] %v983_v18 }
 0x5b4   :  { %989 = vsyncpa [#allocation3], 1 }
 0x5b5   :  { %990 = vsyncpa [#allocation5], 1 }

</bundles_post_ra>
